<compile_context>
chip_gen: v5e
topology: v5e:2x2
jax: 0.10.0
libtpu: 0.0.40
codegen_flags: <defaults>
</compile_context>

<pallas_src>
import functools

import jax
import jax.numpy as jnp
from jax import lax
from jax.experimental import pallas as pl
from jax.experimental.pallas import tpu as pltpu


def _se_kernel(x_ref, w1_ref, b1_ref, w2_ref, b2_ref, o_ref, g_ref, *, c_chunk):
    """One grid step: NB samples in native NCHW layout.

    x_ref : (NB, C, HW)  H*W on the 128-lane axis (no wrapper transpose)
    w1    : (Cr, C)      conv_reduce weight (original PyTorch layout)
    b1    : (Cr, 1)
    w2    : (C, Cr)      conv_expand weight (original PyTorch layout)
    b2    : (C, 1)
    o_ref : (NB, C, HW)
    g_ref : (C, NB) f32  scratch: pooled vector, then the gate
    """
    nb, c, hw = x_ref.shape
    n_full = c // c_chunk
    rem = c - n_full * c_chunk
    inv_hw = jnp.float32(1.0 / hw)

    # ---- squeeze: global average pool over H*W (cross-lane reduce per chunk) ----
    def pool_chunk(c0, cc):
        for b in range(nb):                                   # nb <= 8, static unroll
            xs = x_ref[b, pl.ds(c0, cc), :].astype(jnp.float32)        # (cc, HW)
            g_ref[pl.ds(c0, cc), pl.ds(b, 1)] = (
                jnp.sum(xs, axis=-1, keepdims=True) * inv_hw)          # (cc, 1)

    def pool_body(j, carry):
        pool_chunk(pl.multiple_of(j * c_chunk, c_chunk), c_chunk)
        return carry

    if n_full > 0:
        lax.fori_loop(0, n_full, pool_body, 0, unroll=(n_full <= 4))
    if rem > 0:
        pool_chunk(n_full * c_chunk, rem)

    # ---- excite: two small matmuls batched over NB samples, f32 accumulation ----
    pooled = g_ref[...]                                                # (C, NB)
    s1 = jnp.dot(w1_ref[...], pooled, preferred_element_type=jnp.float32)
    s1 = jnp.maximum(s1 + b1_ref[...], 0.0)                            # (Cr, NB)
    s2 = jnp.dot(w2_ref[...], s1, preferred_element_type=jnp.float32)
    s2 = s2 + b2_ref[...]                                              # (C, NB)
    # hard_sigmoid(x) = relu6(x + 3) / 6 ; stash the gate back into the scratch.
    g_ref[...] = jnp.clip(s2 + 3.0, 0.0, 6.0) * jnp.float32(1.0 / 6.0)

    # ---- scale: per-chunk broadcast multiply, lane-dense stores over H*W ----
    def scale_chunk(c0, cc):
        for b in range(nb):
            g = g_ref[pl.ds(c0, cc), pl.ds(b, 1)].astype(o_ref.dtype)  # (cc, 1)
            o_ref[b, pl.ds(c0, cc), :] = x_ref[b, pl.ds(c0, cc), :] * g

    def scale_body(j, carry):
        scale_chunk(pl.multiple_of(j * c_chunk, c_chunk), c_chunk)
        return carry

    if n_full > 0:
        lax.fori_loop(0, n_full, scale_body, 0, unroll=(n_full <= 4))
    if rem > 0:
        scale_chunk(n_full * c_chunk, rem)


def _vmem_capacity_bytes():
    try:
        cap = int(pltpu.get_tpu_info().vmem_capacity_bytes)
    except Exception:
        cap = 64 * 1024 * 1024          # conservative fallback (v7x per-TC VMEM)
    return min(max(cap, 64 * 1024 * 1024), 128 * 1024 * 1024)


def _pick_tiling(n, c, cr, hw, itemsize):
    """Choose (samples per grid step, channel chunk, vmem limit)."""
    cap = _vmem_capacity_bytes()
    # Leave >= 1/8th of physical VMEM for compiler-internal scratch:
    #   v7x (64 MiB) -> 56 MiB limit, v5e/v6e (128 MiB) -> 112 MiB limit.
    vmem_limit = cap - max(8 * 1024 * 1024, cap // 8)

    # Resident parameters are double-buffered by the pipeline; subtract them,
    # plus a margin for the (C, NB) gate scratch and in-kernel f32 temporaries.
    # (Weights stay f32 to match module numerics; casting them to bf16 would
    # halve this term if precision allows.)
    param_bytes = 2 * (cr * c + c * cr + cr + c) * 4
    margin = 8 * 1024 * 1024
    slab_budget = max(2 * 1024 * 1024, vmem_limit - param_bytes - margin)

    # The pipeline holds 2x input + 2x output slabs per grid step.
    per_sample = 4 * c * hw * itemsize
    nb = max(1, min(n, 8, slab_budget // max(per_sample, 1)))
    # Keep the per-chunk live set (nb * c_chunk * HW * 4B f32, c_chunk >= 8)
    # within roughly the vreg file so the VPU loops don't spill.
    live_target = 96 * 1024
    nb = max(1, min(nb, live_target // max(8 * hw * 4, 1)))

    # Prefer an even number of grid steps (v7x megacore balance), and an exact
    # divisor of N when possible so the final block isn't ragged.  Harmless on
    # single-TC v5e/v6e (at most a few extra ~0.35us steps).
    if n >= 2:
        even = [cand for cand in range(nb, 0, -1) if (-(-n // cand)) % 2 == 0]
        exact = [cand for cand in even if n % cand == 0]
        if exact:
            nb = exact[0]
        elif even:
            nb = even[0]

    c_chunk = max(8, (live_target // max(nb * hw * 4, 1)) // 8 * 8)
    c_chunk = min(c_chunk, max(c, 1))

    # TODO(synk): add a spatial-tiled two-pass fallback for the (unlikely for
    # ResNet50 shapes) case where a single sample + weights exceed VMEM.
    return nb, c_chunk, int(vmem_limit)


@functools.partial(jax.jit, static_argnames=("donate_x",))
def squeeze_excite(x_nchw, w1, b1, w2, b2, *, donate_x=False):
    """SqueezeExcite forward.

    x_nchw: (N, C, H, W).  w1: (Cr, C)  b1: (Cr,)  w2: (C, Cr)  b2: (C,)
    (1x1-conv weights with the trailing 1x1 dims squeezed, as in nn.Conv2d.)
    """
    n, c, h, w = x_nchw.shape
    cr = w1.shape[0]
    hw = h * w

    nb, c_chunk, vmem_limit = _pick_tiling(n, c, cr, hw, x_nchw.dtype.itemsize)

    # Free reshape only -- no layout change, no extra HBM pass.
    x = x_nchw.reshape(n, c, hw)
    b1c = b1.reshape(cr, 1)
    b2c = b2.reshape(c, 1)

    kernel = functools.partial(_se_kernel, c_chunk=c_chunk)
    out = pl.pallas_call(
        kernel,
        out_shape=jax.ShapeDtypeStruct((n, c, hw), x.dtype),
        grid_spec=pltpu.PrefetchScalarGridSpec(
            num_scalar_prefetch=0,
            grid=(pl.cdiv(n, nb),),            # ragged final block masked by Pallas
            in_specs=[
                pl.BlockSpec((nb, c, hw), lambda i: (i, 0, 0)),
                pl.BlockSpec((cr, c), lambda i: (0, 0)),   # resident across steps
                pl.BlockSpec((cr, 1), lambda i: (0, 0)),
                pl.BlockSpec((c, cr), lambda i: (0, 0)),
                pl.BlockSpec((c, 1), lambda i: (0, 0)),
            ],
            out_specs=pl.BlockSpec((nb, c, hw), lambda i: (i, 0, 0)),
            scratch_shapes=[pltpu.VMEM((c, nb), jnp.float32)],
        ),
        compiler_params=pltpu.CompilerParams(
            dimension_semantics=("parallel",),
            vmem_limit_bytes=vmem_limit,
        ),
        input_output_aliases=({0: 0} if donate_x else {}),
    )(x, w1, b1c, w2, b2c)

    return out.reshape(n, c, h, w)


def _reference(x, w1, b1, w2, b2):
    pooled = jnp.mean(x, axis=(2, 3), keepdims=True)                       # (N,C,1,1)
    s1 = jnp.einsum("rc,ncij->nrij", w1, pooled) + b1.reshape(1, -1, 1, 1)
    s1 = jnp.maximum(s1, 0.0)
    s2 = jnp.einsum("cr,nrij->ncij", w2, s1) + b2.reshape(1, -1, 1, 1)
    gate = jnp.clip(s2 + 3.0, 0.0, 6.0) / 6.0
    return x * gate


if __name__ == "__main__":
    key = jax.random.PRNGKey(0)
    k_x, k_w1, k_b1, k_w2, k_b2 = jax.random.split(key, 5)

    # Module config: in_chs=8, se_ratio=0.25 -> reduced_chs=2
    N, C, H, W = 2, 8, 16, 16
    Cr = int(C * 0.25)

    x = jax.random.normal(k_x, (N, C, H, W), dtype=jnp.float32)

    # Synthetic parameters; shapes match nn.Conv2d 1x1 weights (1x1 squeezed).
    w1 = 0.1 * jax.random.normal(k_w1, (Cr, C), dtype=jnp.float32)   # conv_reduce.weight
    b1 = 0.1 * jax.random.normal(k_b1, (Cr,), dtype=jnp.float32)     # conv_reduce.bias
    w2 = 0.1 * jax.random.normal(k_w2, (C, Cr), dtype=jnp.float32)   # conv_expand.weight
    b2 = 0.1 * jax.random.normal(k_b2, (C,), dtype=jnp.float32)      # conv_expand.bias

    out = squeeze_excite(x, w1, b1, w2, b2)
    out = jax.block_until_ready(out)

    ref = _reference(x, w1, b1, w2, b2)
    assert out.shape == (N, C, H, W)
    assert jnp.allclose(out, ref, atol=1e-5, rtol=1e-5), "mismatch vs reference"

    print("KERNEL_OK")
</pallas_src>

<mosaic_0001>
module attributes {stable_mosaic.version = 11 : i64} {
  func.func @_se_kernel(%arg0: i32, %arg1: memref<1x8x256xf32, #tpu.memory_space<vmem>>, %arg2: memref<2x8xf32, #tpu.memory_space<vmem>>, %arg3: memref<2x1xf32, #tpu.memory_space<vmem>>, %arg4: memref<8x2xf32, #tpu.memory_space<vmem>>, %arg5: memref<8x1xf32, #tpu.memory_space<vmem>>, %arg6: memref<1x8x256xf32, #tpu.memory_space<vmem>>, %arg7: memref<8x1xf32, #tpu.memory_space<vmem>>) attributes {dimension_semantics = [#tpu.dimension_semantics<parallel>], iteration_bounds = array<i64: 2>, scalar_prefetch = 0 : i64, scratch_operands = 1 : i64, tpu.core_type = #tpu.core_type<tc>, window_params = [{transform_indices = @transform_0, window_bounds = array<i64: 1, 8, 256>}, {pipeline_mode = #tpu.pipeline_mode<synchronous>, transform_indices = @transform_1, window_bounds = array<i64: 2, 8>}, {pipeline_mode = #tpu.pipeline_mode<synchronous>, transform_indices = @transform_2, window_bounds = array<i64: 2, 1>}, {pipeline_mode = #tpu.pipeline_mode<synchronous>, transform_indices = @transform_3, window_bounds = array<i64: 8, 2>}, {pipeline_mode = #tpu.pipeline_mode<synchronous>, transform_indices = @transform_4, window_bounds = array<i64: 8, 1>}, {transform_indices = @transform_5, window_bounds = array<i64: 1, 8, 256>}]} {
    %cst = arith.constant 3.906250e-03 : f32
    %c0_i32 = arith.constant 0 : i32
    %c8_i32 = arith.constant 8 : i32
    %0 = arith.muli %c0_i32, %c8_i32 : i32
    %1 = tpu.assume_multiple %0, 8 : i32
    %c0 = arith.constant 0 : index
    %2 = arith.index_cast %1 : i32 to index
    %c0_0 = arith.constant 0 : index
    %3 = vector.load %arg1[%c0, %2, %c0_0] : memref<1x8x256xf32, #tpu.memory_space<vmem>>, vector<1x8x256xf32>
    %4 = vector.shape_cast %3 : vector<1x8x256xf32> to vector<8x256xf32>
    %cst_1 = arith.constant dense<0.000000e+00> : vector<8xf32>
    %5 = vector.multi_reduction <add>, %4, %cst_1 [1] : vector<8x256xf32> to vector<8xf32>
    %6 = vector.shape_cast %5 : vector<8xf32> to vector<8x1xf32>
    %7 = vector.broadcast %cst : f32 to vector<8x1xf32>
    %8 = arith.mulf %6, %7 : vector<8x1xf32>
    %9 = arith.index_cast %1 : i32 to index
    %c0_2 = arith.constant 0 : index
    %10 = vector.load %arg7[%9, %c0_2] : memref<8x1xf32, #tpu.memory_space<vmem>>, vector<8x1xf32>
    tpu.vector_store %arg7[%9, %c0_2], %8 {strides = array<i32>} : memref<8x1xf32, #tpu.memory_space<vmem>>, vector<8x1xf32>,
    %c1_i32 = arith.constant 1 : i32
    %c0_3 = arith.constant 0 : index
    %c0_4 = arith.constant 0 : index
    %11 = vector.load %arg7[%c0_3, %c0_4] : memref<8x1xf32, #tpu.memory_space<vmem>>, vector<8x1xf32>
    %c0_5 = arith.constant 0 : index
    %c0_6 = arith.constant 0 : index
    %12 = vector.load %arg2[%c0_5, %c0_6] : memref<2x8xf32, #tpu.memory_space<vmem>>, vector<2x8xf32>
    %cst_7 = arith.constant dense<0.000000e+00> : vector<2x1xf32>
    %13 = tpu.matmul %12, %11, %cst_7 {dimension_numbers = #tpu.dot_dimension_numbers<[1], [0], [0], [1], [0, 0, 1, 1], [], []>} : vector<2x8xf32>, vector<8x1xf32>, vector<2x1xf32> -> vector<2x1xf32>
    %c0_8 = arith.constant 0 : index
    %c0_9 = arith.constant 0 : index
    %14 = vector.load %arg3[%c0_8, %c0_9] : memref<2x1xf32, #tpu.memory_space<vmem>>, vector<2x1xf32>
    %15 = arith.addf %13, %14 : vector<2x1xf32>
    %cst_10 = arith.constant 0.000000e+00 : f32
    %16 = vector.broadcast %cst_10 : f32 to vector<2x1xf32>
    %17 = arith.maximumf %15, %16 : vector<2x1xf32>
    %c0_11 = arith.constant 0 : index
    %c0_12 = arith.constant 0 : index
    %18 = vector.load %arg4[%c0_11, %c0_12] : memref<8x2xf32, #tpu.memory_space<vmem>>, vector<8x2xf32>
    %cst_13 = arith.constant dense<0.000000e+00> : vector<8x1xf32>
    %19 = tpu.matmul %18, %17, %cst_13 {dimension_numbers = #tpu.dot_dimension_numbers<[1], [0], [0], [1], [0, 0, 1, 1], [], []>} : vector<8x2xf32>, vector<2x1xf32>, vector<8x1xf32> -> vector<8x1xf32>
    %c0_14 = arith.constant 0 : index
    %c0_15 = arith.constant 0 : index
    %20 = vector.load %arg5[%c0_14, %c0_15] : memref<8x1xf32, #tpu.memory_space<vmem>>, vector<8x1xf32>
    %21 = arith.addf %19, %20 : vector<8x1xf32>
    %cst_16 = arith.constant 3.000000e+00 : f32
    %22 = vector.broadcast %cst_16 : f32 to vector<8x1xf32>
    %23 = arith.addf %21, %22 : vector<8x1xf32>
    %cst_17 = arith.constant 0.000000e+00 : f32
    %cst_18 = arith.constant 6.000000e+00 : f32
    %24 = vector.broadcast %cst_17 : f32 to vector<8x1xf32>
    %25 = arith.maximumf %24, %23 : vector<8x1xf32>
    %26 = vector.broadcast %cst_18 : f32 to vector<8x1xf32>
    %27 = arith.minimumf %26, %25 : vector<8x1xf32>
    %cst_19 = arith.constant 0.166666672 : f32
    %28 = vector.broadcast %cst_19 : f32 to vector<8x1xf32>
    %29 = arith.mulf %27, %28 : vector<8x1xf32>
    %c0_20 = arith.constant 0 : index
    %c0_21 = arith.constant 0 : index
    %30 = vector.load %arg7[%c0_20, %c0_21] : memref<8x1xf32, #tpu.memory_space<vmem>>, vector<8x1xf32>
    tpu.vector_store %arg7[%c0_20, %c0_21], %29 {strides = array<i32>} : memref<8x1xf32, #tpu.memory_space<vmem>>, vector<8x1xf32>,
    %c0_i32_22 = arith.constant 0 : i32
    %c8_i32_23 = arith.constant 8 : i32
    %31 = arith.muli %c0_i32_22, %c8_i32_23 : i32
    %32 = tpu.assume_multiple %31, 8 : i32
    %33 = arith.index_cast %32 : i32 to index
    %c0_24 = arith.constant 0 : index
    %34 = vector.load %arg7[%33, %c0_24] : memref<8x1xf32, #tpu.memory_space<vmem>>, vector<8x1xf32>
    %c0_25 = arith.constant 0 : index
    %35 = arith.index_cast %32 : i32 to index
    %c0_26 = arith.constant 0 : index
    %36 = vector.load %arg1[%c0_25, %35, %c0_26] : memref<1x8x256xf32, #tpu.memory_space<vmem>>, vector<1x8x256xf32>
    %37 = vector.shape_cast %36 : vector<1x8x256xf32> to vector<8x256xf32>
    %38 = vector.broadcast %34 : vector<8x1xf32> to vector<8x256xf32>
    %39 = arith.mulf %37, %38 : vector<8x256xf32>
    %c0_27 = arith.constant 0 : index
    %40 = arith.index_cast %32 : i32 to index
    %c0_28 = arith.constant 0 : index
    %41 = vector.load %arg6[%c0_27, %40, %c0_28] : memref<1x8x256xf32, #tpu.memory_space<vmem>>, vector<1x8x256xf32>
    %42 = vector.shape_cast %41 : vector<1x8x256xf32> to vector<8x256xf32>
    %43 = vector.shape_cast %39 : vector<8x256xf32> to vector<1x8x256xf32>
    tpu.vector_store %arg6[%c0_27, %40, %c0_28], %43 {strides = array<i32>} : memref<1x8x256xf32, #tpu.memory_space<vmem>>, vector<1x8x256xf32>,
    %c1_i32_29 = arith.constant 1 : i32
    return
  }
  func.func @transform_0(%arg0: i32) -> (i32, i32, i32) {
    %c0_i32 = arith.constant 0 : i32
    %c0_i32_0 = arith.constant 0 : i32
    %c0_i32_1 = arith.constant 0 : i32
    return %arg0, %c0_i32, %c0_i32_0 : i32, i32, i32
  }
  func.func @transform_1(%arg0: i32) -> (i32, i32) {
    %c0_i32 = arith.constant 0 : i32
    %c0_i32_0 = arith.constant 0 : i32
    %c0_i32_1 = arith.constant 0 : i32
    return %c0_i32, %c0_i32_0 : i32, i32
  }
  func.func @transform_2(%arg0: i32) -> (i32, i32) {
    %c0_i32 = arith.constant 0 : i32
    %c0_i32_0 = arith.constant 0 : i32
    %c0_i32_1 = arith.constant 0 : i32
    return %c0_i32, %c0_i32_0 : i32, i32
  }
  func.func @transform_3(%arg0: i32) -> (i32, i32) {
    %c0_i32 = arith.constant 0 : i32
    %c0_i32_0 = arith.constant 0 : i32
    %c0_i32_1 = arith.constant 0 : i32
    return %c0_i32, %c0_i32_0 : i32, i32
  }
  func.func @transform_4(%arg0: i32) -> (i32, i32) {
    %c0_i32 = arith.constant 0 : i32
    %c0_i32_0 = arith.constant 0 : i32
    %c0_i32_1 = arith.constant 0 : i32
    return %c0_i32, %c0_i32_0 : i32, i32
  }
  func.func @transform_5(%arg0: i32) -> (i32, i32, i32) {
    %c0_i32 = arith.constant 0 : i32
    %c0_i32_0 = arith.constant 0 : i32
    %c0_i32_1 = arith.constant 0 : i32
    return %arg0, %c0_i32, %c0_i32_0 : i32, i32, i32
  }
}

</mosaic_0001>

<bundles_post_ra>
// kernel: squeeze_excite.1
= control target key start
LH: loop header
LB: loop body
LE: loop exit
PB: predicated region body
PF: predicated region fallthrough
CT: control target
= control target key end

     0   :  { %s433_s18 = smov 0   ;;  %s471_s0 = inlined_call_operand.vmem [shape: f32[2,8,256], index: 0, kind: input, shape index: {}]   ;;  %s472_s1 = inlined_call_operand.vmem [shape: f32[2,8], index: 1, kind: input, shape index: {}]   ;;  %s473_s2 = inlined_call_operand.vmem [shape: f32[2,1], index: 2, kind: input, shape index: {}]   ;;  %s474_s3 = inlined_call_operand.vmem [shape: f32[8,2], index: 3, kind: input, shape index: {}]   ;;  %s475_s4 = inlined_call_operand.vmem [shape: f32[8,1], index: 4, kind: input, shape index: {}]   ;;  %s476_s5 = inlined_call_operand.vmem [shape: f32[2,8,256], index: 5, kind: output, shape index: {}]  }
   0x1 LB: > { %s368_s19 = sadd.s32 4294967295, %s400_s18   ;;  %p372_p0 = scmp.ge.s32.totalorder %s400_s18, 1  ;;  %s400_s18 = sphi %s433_s18, %s15_s18  }
   0x2   : > { %p187_p1 = scmp.lt.s32.totalorder %s400_s18, 3 }
   0x4   : > { %p188_p2 = pnand %p372_p0, %p187_p1 }
   0x5   : > { %p215_p3 = scmp.lt.s32.totalorder (!%p188_p2), %s368_s19, 1 }
   0x6   : > { %191 = sbr.rel (%p188_p2) target bundleno = 538 (0x21a), region = 40 }
   0xb   : > { %s478_s19 = smov (!%p215_p3, %s368_s19), 1  ;;  %vm234_vm0 = vcmask 7168   ;;  %v237_v5 = vld [vmem:[%s472_s1] sm:$0x3]  ;;  %vm239_vm1 = vcmask 64512   ;;  %vm270_vm2 = vcmask 1041408  }
   0xc   : > { %s382_s20 = sshll.u32 %s478_s19, 4  ;;  %v238_v7 = vld [vmem:[%s473_s2] sm:$0x3]  ;;  %vm266_vm3 = vcmask 15360   ;;  %v402_v12 = vmov 0  }
   0xd   : > { %s219_s23 = scalar_lea.vmem %s471_s0, %s382_s20  ;;  %v264_v11 = vld [vmem:[%s474_s3] sm:$0xff]  ;;  %393 = vset.pattern.permute.xlu0 %v402_v12  ;;  %s224_s9 = scalar_lea.vmem %s476_s5, %s382_s20 }
   0xe   : > { %v228_v0 = vld [vmem:[%s219_s23] sm:$0xff]  ;;  %v229_v1 = vld [vmem:[%s219_s23 + $0x8] sm:$0xff] }
   0xf   : > { %v230_v2 = vadd.f32 %v229_v1, %v228_v0  ;;  %v265_v13 = vld [vmem:[%s475_s4] sm:$0xff] }
  0x11   : > { %231 = vadd.xlane.f32.xlu0 %v230_v2 }
  0x84   : > { %v232_v3 = vpop.xlane.xlu0 %231 }
  0x85   : > { %v233_v4 = vmul.f32 0.00390625, %v232_v3 }
  0x87   : > { %235 = vst.msk [vmem:[#allocation2] sm:$0xff] %vm234_vm0, %v233_v4 }
  0x8e   : > { %v236_v6 = vld [vmem:[#allocation2] sm:$0xff] }
  0x8f   : > { %258 = vmatpush.msra.mxu0 %v236_v6 }
  0x90   : > { %377 = vmatmul.msk.f32.vlgmr.msra.gmra.mxu0 %vm239_vm1, %v237_v5 }
 0x10d   : > { %v260_v8 = vpop.f32.mrf.mxu0 }
 0x10e   : > { %v261_v9 = vadd.f32 %v260_v8, %v238_v7 }
 0x110   : > { %v263_v10 = vmax.f32 %v261_v9, 0.0 }
 0x112   : > { %378 = vmatpush.msk.msra.mxu1 %vm270_vm2, %v263_v10 }
 0x113   : > { %379 = vmatmul.msk.f32.vlgmr.msra.gmra.mxu1 %vm266_vm3, %v264_v11 }
 0x190   : > { %v291_v14 = vpop.f32.mrf.mxu1 }
 0x191   : > { %v292_v15 = vadd.f32 %v291_v14, %v265_v13 }
 0x193   : > { %v294_v16 = vadd.f32 3.0, %v292_v15 }
 0x195   : > { %v295_v17 = vmax.f32 %v294_v16, 0.0 }
 0x197   : > { %v296_v18 = vmin.f32 %v295_v17, 6.0 }
 0x199   : > { %v297_v19 = vmul.f32 0.16666667, %v296_v18 }
 0x19b   : > { %298 = vst.msk [vmem:[#allocation2] sm:$0xff] %vm234_vm0, %v297_v19 }
 0x1a2   : > { %v299_v20 = vld [vmem:[#allocation2] sm:$0xff] }
 0x1a3   : > { %304 = vperm.xlu0 %393, %v299_v20  }
 0x215   : > { %v305_v21 = vpop.permute.xlu0 %304 }
 0x216   : > { %v307_v22 = vmul.f32 %v305_v21, %v228_v0  ;;  %v308_v23 = vmul.f32 %v305_v21, %v229_v1 }
 0x218   : > { %311 = vst [vmem:[%s224_s9] sm:$0xff] %v307_v22 }
 0x219   : > { %312 = vst [vmem:[%s224_s9 + $0x8] sm:$0xff] %v308_v23 }
 0x21a PF: > { %s15_s18 = sadd.s32 1, %s400_s18  }
 0x21b   : > { %p12_p4 = scmp.ge.s32.totalorder %s15_s18, 4  }
 0x21d   :  { %14 = sbr.rel (!%p12_p4) target bundleno = 1 (0x1), region = 72 }

</bundles_post_ra>
